<compile_context>
chip_gen: v7x
topology: tpu7x:2x2x1
jax: 0.10.0
libtpu: 0.0.40
codegen_flags: <defaults>
</compile_context>

<pallas_src>
import functools

import jax
import jax.numpy as jnp
from jax import lax
from jax.experimental import pallas as pl
from jax.experimental.pallas import tpu as pltpu


_NEG_BIG = -1e30  # finite "-inf" (avoids inf-inf NaNs on masked columns)


def _round_up(x, m):
    return ((x + m - 1) // m) * m


def _round_down(x, m):
    return (x // m) * m


def _cdiv(a, b):
    return (a + b - 1) // b


def _vmem_capacity_bytes():
    try:
        cap = int(pltpu.get_tpu_info().vmem_capacity_bytes)
        if cap > 0:
            return cap
    except Exception:
        pass
    return 64 * 1024 * 1024  # conservative fallback: v7x per-TensorCore VMEM


def _ldam_full_kernel(n_rows, tile_n,
                      logit_ref, tgt_ref, margin_ref, picked_ref, out_ref):
    """Single pass over the full class row: fused one-hot margin + LSE."""
    i = pl.program_id(0)

    logit = logit_ref[...].astype(jnp.float32)       # (TN, C), f32 compute
    tgt = tgt_ref[...]                               # (TN, 1) int32
    margin = margin_ref[...].astype(jnp.float32)     # (TN, 1) = m_list[target]*s
    picked = picked_ref[...].astype(jnp.float32)     # (TN, 1) = logit[i, target[i]]

    tn, c = logit.shape
    col = lax.broadcasted_iota(jnp.int32, (tn, c), 1)
    # Fused margin subtraction on the target column only (no extra (TN,C) temp).
    adj = jnp.where(col == tgt, logit - margin, logit)

    row_max = jnp.max(adj, axis=-1, keepdims=True)                    # (TN, 1)
    sumexp = jnp.sum(jnp.exp(adj - row_max), axis=-1, keepdims=True)  # (TN, 1)
    lse = row_max + jnp.log(sumexp)

    loss_i = lse - (picked - margin)                 # -log_softmax(adj)[tgt]

    # Mask rows of a partial last batch tile (reads past N are undefined).
    row = i * tile_n + lax.broadcasted_iota(jnp.int32, (tn, 1), 0)
    loss_i = jnp.where(row < n_rows, loss_i, 0.0)

    partial = jnp.sum(loss_i, axis=0, keepdims=True)                  # (1, 1)
    out_ref[...] = jnp.broadcast_to(partial, out_ref.shape)           # (1, 8, 128)


def _ldam_tiled_kernel(n_rows, tile_n, n_classes, class_tile,
                       logit_ref, tgt_ref, margin_ref, picked_ref, out_ref,
                       m_sc, l_sc):
    """Class-tiled online (flash-style) LSE for vocab-scale class counts."""
    i = pl.program_id(0)
    j = pl.program_id(1)

    @pl.when(j == 0)
    def _():
        m_sc[...] = jnp.full_like(m_sc, _NEG_BIG)
        l_sc[...] = jnp.zeros_like(l_sc)

    logit = logit_ref[...].astype(jnp.float32)       # (TN, TC)
    tgt = tgt_ref[...]                               # (TN, 1)
    margin = margin_ref[...].astype(jnp.float32)     # (TN, 1)

    tn, tc = logit.shape
    col = j * class_tile + lax.broadcasted_iota(jnp.int32, (tn, tc), 1)
    adj = jnp.where(col == tgt, logit - margin, logit)
    adj = jnp.where(col < n_classes, adj, _NEG_BIG)  # mask partial class tile

    m_prev = m_sc[...]
    m_new = jnp.maximum(m_prev, jnp.max(adj, axis=-1, keepdims=True))
    alpha = jnp.exp(m_prev - m_new)
    l_sc[...] = alpha * l_sc[...] + jnp.sum(jnp.exp(adj - m_new),
                                            axis=-1, keepdims=True)
    m_sc[...] = m_new

    @pl.when(j == pl.num_programs(1) - 1)
    def _():
        picked = picked_ref[...].astype(jnp.float32)
        lse = m_sc[...] + jnp.log(l_sc[...])
        loss_i = lse - (picked - margin)
        row = i * tile_n + lax.broadcasted_iota(jnp.int32, (tn, 1), 0)
        loss_i = jnp.where(row < n_rows, loss_i, 0.0)
        partial = jnp.sum(loss_i, axis=0, keepdims=True)
        out_ref[...] = jnp.broadcast_to(partial, out_ref.shape)


def make_m_list(cls_num_list, max_m=0.5):
    """m_list = 1 / n_c^{1/4}, rescaled so its max equals max_m."""
    cls_num_list = jnp.asarray(cls_num_list, dtype=jnp.float32)
    m_list = 1.0 / jnp.sqrt(jnp.sqrt(cls_num_list))
    return m_list * (max_m / jnp.max(m_list))


def ldam_loss(logit, target, m_list, s=30.0, tile_n=1024, class_tile=None):
    """logit: (N, C) f32/bf16, target: (N,) int, m_list: (C,) f32. Scalar f32."""
    n, c = logit.shape
    target = target.astype(jnp.int32)

    # Per-sample quantities gathered OUTSIDE the kernel (N-sized, cheap in XLA):
    #   margin[i] = m_list[target[i]] * s ;  picked[i] = logit[i, target[i]]
    # TODO(synk): out-of-range targets are silently clamped by the gather (same
    # behavioral class as the torch version); assert upstream if needed.
    tgt_col = target.reshape(n, 1)
    margin = (m_list.astype(jnp.float32)[target] * jnp.float32(s)).reshape(n, 1)
    picked = jnp.take_along_axis(logit, tgt_col, axis=1).astype(jnp.float32)

    itemsize = jnp.dtype(logit.dtype).itemsize
    row_align = 8 * max(1, 4 // itemsize)      # 8 rows f32, 16 bf16, 32 int8
    clanes = _round_up(c, 128)                 # lanes the full class row occupies

    cap = _vmem_capacity_bytes()
    budget = int(0.40 * cap)                   # target tile working set
    # VMEM bytes per batch row at full class width:
    #   double-buffered input block + ~4 tile-sized f32 temporaries.
    bytes_per_row_full = clanes * (2 * itemsize + 4 * 4)

    # Row tile: requested cap, but guarantee >= 4 row tiles when N allows
    # (keeps both v7x TensorCores busy through the "parallel" grid axis).
    want_rows = min(_round_up(max(tile_n, 1), row_align),
                    _round_up(_cdiv(n, 4), row_align),
                    _round_up(n, row_align))
    max_full_rows = max(0, _round_down(budget // bytes_per_row_full, row_align))

    use_class_tiling = (class_tile is not None) or \
                       (max_full_rows < min(want_rows, 128))

    if not use_class_tiling:
        tn = min(want_rows, max(row_align, max_full_rows))
        tc = c
    else:
        if class_tile is not None:
            tc = _round_up(max(class_tile, 1), 128)
        else:
            tc = _round_down(max(budget // (256 * (2 * itemsize + 16)), 128), 128)
        tc = min(tc, clanes)
        if tc >= c:
            tc = c                             # degenerate: one full-extent class tile
        lanes_t = _round_up(tc, 128)
        tn = min(want_rows,
                 max(row_align,
                     _round_down(budget // (lanes_t * (2 * itemsize + 16)),
                                 row_align)))
    if tn >= n:
        tn = n                                 # single full-extent row block

    lanes = _round_up(tc, 128)
    num_row_tiles = _cdiv(n, tn)

    # Explicit VMEM budget: double-buffered inputs + in-kernel f32 temporaries
    # + scratch + output, with headroom; capped under the physical capacity.
    est = (2 * tn * lanes * itemsize           # logit block, double-buffered
           + 4 * tn * lanes * 4                # f32 temps (cast/adj/exp/select)
           + 6 * tn * 4                        # target / margin / picked columns
           + 2 * tn * 4                        # online-LSE scratch
           + 2 * 8 * 128 * 4                   # output block
           + (2 << 20))
    vmem_limit = int(min(cap - (8 << 20), max(32 << 20, 2 * est)))
    vmem_limit = max(vmem_limit, est + (2 << 20))

    out_shape = jax.ShapeDtypeStruct((num_row_tiles, 8, 128), jnp.float32)

    if not use_class_tiling:
        partials = pl.pallas_call(
            functools.partial(_ldam_full_kernel, n, tn),
            out_shape=out_shape,
            grid=(num_row_tiles,),
            in_specs=[
                pl.BlockSpec((tn, c), lambda i: (i, 0)),   # full-extent class row
                pl.BlockSpec((tn, 1), lambda i: (i, 0)),
                pl.BlockSpec((tn, 1), lambda i: (i, 0)),
                pl.BlockSpec((tn, 1), lambda i: (i, 0)),
            ],
            out_specs=pl.BlockSpec((1, 8, 128), lambda i: (i, 0, 0)),
            compiler_params=pltpu.CompilerParams(
                dimension_semantics=("parallel",),
                vmem_limit_bytes=vmem_limit,
            ),
        )(logit, tgt_col, margin, picked)
    else:
        num_class_tiles = _cdiv(c, tc)
        partials = pl.pallas_call(
            functools.partial(_ldam_tiled_kernel, n, tn, c, tc),
            out_shape=out_shape,
            grid=(num_row_tiles, num_class_tiles),
            in_specs=[
                pl.BlockSpec((tn, tc), lambda i, j: (i, j)),
                pl.BlockSpec((tn, 1), lambda i, j: (i, 0)),
                pl.BlockSpec((tn, 1), lambda i, j: (i, 0)),
                pl.BlockSpec((tn, 1), lambda i, j: (i, 0)),
            ],
            out_specs=pl.BlockSpec((1, 8, 128), lambda i, j: (i, 0, 0)),
            scratch_shapes=[pltpu.VMEM((tn, 1), jnp.float32),
                            pltpu.VMEM((tn, 1), jnp.float32)],
            compiler_params=pltpu.CompilerParams(
                dimension_semantics=("parallel", "arbitrary"),
                vmem_limit_bytes=vmem_limit,
            ),
        )(logit, tgt_col, margin, picked)

    # Tiny final reduction + unweighted mean (reduction='mean') in plain JAX.
    return jnp.sum(partials[:, 0, 0]) / jnp.float32(n)


if __name__ == "__main__":
    MAX_M, S = 0.5, 30.0
    root = jax.random.PRNGKey(0)

    def reference(logit, target, m_list, s):
        """Pure-JAX replica of the torch LDAMLoss forward (f32 compute)."""
        logit = logit.astype(jnp.float32)
        n, c = logit.shape
        batch_m = m_list.astype(jnp.float32)[target]
        one_hot = jax.nn.one_hot(target, c, dtype=jnp.float32)
        adj = logit - one_hot * (batch_m * s)[:, None]
        logp = jax.nn.log_softmax(adj, axis=-1)
        return -jnp.mean(logp[jnp.arange(n), target])

    # (name, N, C, dtype, forced class_tile) — exercises full-row path,
    # class-tiled online-LSE path (partial class tile), and bf16 inputs.
    cases = [
        ("full_row_f32",    10,  16, jnp.float32,  None),
        ("class_tiled_f32", 24, 400, jnp.float32,  128),
        ("full_row_bf16",   33,  40, jnp.bfloat16, None),
    ]
    keys = jax.random.split(root, 2 * len(cases))

    for idx, (name, n, c, dtype, ct) in enumerate(cases):
        k_logit, k_tgt = keys[2 * idx], keys[2 * idx + 1]
        # Deterministic synthetic long-tailed class-frequency list.
        cls_num_list = 1000.0 * (0.97 ** jnp.arange(c, dtype=jnp.float32)) + 1.0
        m_list = make_m_list(cls_num_list, max_m=MAX_M)

        logit = jax.random.normal(k_logit, (n, c), dtype=jnp.float32).astype(dtype)
        target = jax.random.randint(k_tgt, (n,), 0, c, dtype=jnp.int32)

        loss = ldam_loss(logit, target, m_list, s=S, class_tile=ct)
        loss = jax.block_until_ready(loss)
        ref = reference(logit, target, m_list, S)
        assert jnp.allclose(loss, ref, rtol=1e-4, atol=1e-4), \
            (name, float(loss), float(ref))

    print("KERNEL_OK")
</pallas_src>

<mosaic_0001>
module attributes {stable_mosaic.version = 11 : i64} {
  func.func @_ldam_full_kernel(%arg0: i32, %arg1: memref<8x16xf32, #tpu.memory_space<vmem>>, %arg2: memref<8x1xi32, #tpu.memory_space<vmem>>, %arg3: memref<8x1xf32, #tpu.memory_space<vmem>>, %arg4: memref<8x1xf32, #tpu.memory_space<vmem>>, %arg5: memref<1x8x128xf32, #tpu.memory_space<vmem>>) attributes {dimension_semantics = [#tpu.dimension_semantics<parallel>], iteration_bounds = array<i64: 2>, scalar_prefetch = 0 : i64, scratch_operands = 0 : i64, tpu.core_type = #tpu.core_type<tc>, window_params = [{transform_indices = @transform_0, window_bounds = array<i64: 8, 16>}, {transform_indices = @transform_1, window_bounds = array<i64: 8, 1>}, {transform_indices = @transform_2, window_bounds = array<i64: 8, 1>}, {transform_indices = @transform_3, window_bounds = array<i64: 8, 1>}, {transform_indices = @transform_4, window_bounds = array<i64: 1, 8, 128>}]} {
    %c0 = arith.constant 0 : index
    %c0_0 = arith.constant 0 : index
    %0 = vector.load %arg1[%c0, %c0_0] : memref<8x16xf32, #tpu.memory_space<vmem>>, vector<8x16xf32>
    %c0_1 = arith.constant 0 : index
    %c0_2 = arith.constant 0 : index
    %1 = vector.load %arg2[%c0_1, %c0_2] : memref<8x1xi32, #tpu.memory_space<vmem>>, vector<8x1xi32>
    %c0_3 = arith.constant 0 : index
    %c0_4 = arith.constant 0 : index
    %2 = vector.load %arg3[%c0_3, %c0_4] : memref<8x1xf32, #tpu.memory_space<vmem>>, vector<8x1xf32>
    %c0_5 = arith.constant 0 : index
    %c0_6 = arith.constant 0 : index
    %3 = vector.load %arg4[%c0_5, %c0_6] : memref<8x1xf32, #tpu.memory_space<vmem>>, vector<8x1xf32>
    %4 = tpu.iota {dimensions = array<i32: 1>} : vector<8x16xi32>
    %5 = vector.broadcast %1 : vector<8x1xi32> to vector<8x16xi32>
    %6 = arith.cmpi eq, %4, %5 : vector<8x16xi32>
    %7 = vector.broadcast %2 : vector<8x1xf32> to vector<8x16xf32>
    %8 = arith.subf %0, %7 : vector<8x16xf32>
    %9 = arith.select %6, %8, %0 : vector<8x16xi1>, vector<8x16xf32>
    %cst = arith.constant dense<0xFF800000> : vector<8xf32>
    %10 = vector.multi_reduction <maximumf>, %9, %cst [1] : vector<8x16xf32> to vector<8xf32>
    %11 = vector.shape_cast %10 : vector<8xf32> to vector<8x1xf32>
    %12 = vector.broadcast %11 : vector<8x1xf32> to vector<8x16xf32>
    %13 = arith.subf %9, %12 : vector<8x16xf32>
    %14 = math.exp %13 : vector<8x16xf32>
    %cst_7 = arith.constant dense<0.000000e+00> : vector<8xf32>
    %15 = vector.multi_reduction <add>, %14, %cst_7 [1] : vector<8x16xf32> to vector<8xf32>
    %16 = vector.shape_cast %15 : vector<8xf32> to vector<8x1xf32>
    %17 = math.log %16 : vector<8x1xf32>
    %18 = arith.addf %11, %17 : vector<8x1xf32>
    %19 = arith.subf %3, %2 : vector<8x1xf32>
    %20 = arith.subf %18, %19 : vector<8x1xf32>
    %c8_i32 = arith.constant 8 : i32
    %21 = arith.muli %arg0, %c8_i32 : i32
    %22 = tpu.iota {dimensions = array<i32: 0>} : vector<8x1xi32>
    %23 = vector.broadcast %21 : i32 to vector<8x1xi32>
    %24 = arith.addi %23, %22 : vector<8x1xi32>
    %c10_i32 = arith.constant 10 : i32
    %25 = vector.broadcast %c10_i32 : i32 to vector<8x1xi32>
    %26 = arith.cmpi slt, %24, %25 : vector<8x1xi32>
    %cst_8 = arith.constant 0.000000e+00 : f32
    %27 = vector.broadcast %cst_8 : f32 to vector<8x1xf32>
    %28 = arith.select %26, %20, %27 : vector<8x1xi1>, vector<8x1xf32>
    %cst_9 = arith.constant dense<0.000000e+00> : vector<1xf32>
    %29 = vector.multi_reduction <add>, %28, %cst_9 [0] : vector<8x1xf32> to vector<1xf32>
    %30 = vector.shape_cast %29 : vector<1xf32> to vector<1x1xf32>
    %31 = vector.shape_cast %30 : vector<1x1xf32> to vector<1x1x1xf32>
    %32 = vector.broadcast %31 : vector<1x1x1xf32> to vector<1x8x128xf32>
    %c0_10 = arith.constant 0 : index
    %c0_11 = arith.constant 0 : index
    %c0_12 = arith.constant 0 : index
    %33 = vector.load %arg5[%c0_10, %c0_11, %c0_12] : memref<1x8x128xf32, #tpu.memory_space<vmem>>, vector<1x8x128xf32>
    tpu.vector_store %arg5[%c0_10, %c0_11, %c0_12], %32 {strides = array<i32>} : memref<1x8x128xf32, #tpu.memory_space<vmem>>, vector<1x8x128xf32>,
    return
  }
  func.func @transform_0(%arg0: i32) -> (i32, i32) {
    %c0_i32 = arith.constant 0 : i32
    %c0_i32_0 = arith.constant 0 : i32
    return %arg0, %c0_i32 : i32, i32
  }
  func.func @transform_1(%arg0: i32) -> (i32, i32) {
    %c0_i32 = arith.constant 0 : i32
    %c0_i32_0 = arith.constant 0 : i32
    return %arg0, %c0_i32 : i32, i32
  }
  func.func @transform_2(%arg0: i32) -> (i32, i32) {
    %c0_i32 = arith.constant 0 : i32
    %c0_i32_0 = arith.constant 0 : i32
    return %arg0, %c0_i32 : i32, i32
  }
  func.func @transform_3(%arg0: i32) -> (i32, i32) {
    %c0_i32 = arith.constant 0 : i32
    %c0_i32_0 = arith.constant 0 : i32
    return %arg0, %c0_i32 : i32, i32
  }
  func.func @transform_4(%arg0: i32) -> (i32, i32, i32) {
    %c0_i32 = arith.constant 0 : i32
    %c0_i32_0 = arith.constant 0 : i32
    %c0_i32_1 = arith.constant 0 : i32
    return %arg0, %c0_i32, %c0_i32_0 : i32, i32, i32
  }
}

</mosaic_0001>

<bundles_post_ra>
// kernel: tpu_custom_call.1
= control target key start
LH: loop header
LB: loop body
LE: loop exit
PB: predicated region body
PF: predicated region fallthrough
CT: control target
= control target key end

     0   :  { %9 = vsyncpa [#allocation3], 0  ;;  %s666_s0 = inlined_call_operand.vmem [shape: f32[10,16], index: 0, kind: input, shape index: {}]   ;;  %s667_s1 = inlined_call_operand.vmem [shape: s32[10,1], index: 1, kind: input, shape index: {}]   ;;  %s668_s2 = inlined_call_operand.vmem [shape: f32[10,1], index: 2, kind: input, shape index: {}]   ;;  %s669_s3 = inlined_call_operand.vmem [shape: f32[10,1], index: 3, kind: input, shape index: {}]   ;;  %s670_s4 = inlined_call_operand.hbm [shape: f32[2,8,128], index: 4, kind: output, shape index: {}]  }
   0x1   :  { %11 = vsyncpa [#allocation3 + $0x1], 0  ;;  %s556_s15 = smov 0   ;;  %s558_s16 = smov 0  }
   0x2   :  { %s560_s17 = smov 0   ;;  %s562_s18 = smov 0  }
   0x3 LB: > { %s577_s19 = sadd.s32 4294967295, %s527_s18   ;;  %s406_s20 = sadd.s32 4294967294, %s527_s18   ;;  %s527_s18 = sphi %s562_s18, %s676_s18   ;;  %s523_s17 = sphi %s560_s17, %s675_s17   ;;  %s519_s16 = sphi %s558_s16, %s674_s16   ;;  %s515_s15 = sphi %s556_s15, %s673_s15  }
   0x4   : > { %s581_s21 = sadd.s32 1, %s527_s18   ;;  %s128_s22 = sadd.s32 1, %s523_s17 }
   0x5   : > { %s125_s23 = ssub.s32 %s527_s18, %s581_s21  ;;  %p138_p0 = scmp.ne.s32.totalorder %s523_s17, %s519_s16 }
   0x6   : > { %p126_p1 = scmp.eq.s32.totalorder %s125_s23, 0  ;;  %p139_p2 = scmp.eq.s32.totalorder %s577_s19, 1 }
   0x7   : > { %p144_p3 = scmp.ne.s32.totalorder %s519_s16, %s515_s15  ;;  %p145_p4 = scmp.eq.s32.totalorder %s406_s20, 1 }
   0x8   : > { %s592_s24 = scalar_select %p126_p1, %s523_s17, %s128_s22  }
   0x9   : > { %p594_p5 = por %p139_p2, %p138_p0  ;;  %p598_p6 = por %p145_p4, %p144_p3 }
   0xa   : > { %p409_p7 = scmp.ge.s32.totalorder %s527_s18, 1  ;;  %p191_p8 = scmp.lt.s32.totalorder %s527_s18, 3 }
   0xc   : > { %p192_p9 = pnand %p409_p7, %p191_p8 }
   0xd   : > { %p228_p10 = scmp.lt.s32.totalorder (!%p192_p9), %s577_s19, 1  ;;  %v529_v0 = vmov (!%p192_p9), 0   ;;  %v248_v5 = vlaneseq (!%p192_p9)  ;;  %vm261_vm0 = vcmask (!%p192_p9), 130048   ;;  %s415_s20 = sshll.u32 (!%p192_p9), %s577_s19, 3  ;;  %vm283_vm3 = vcmask (!%p192_p9), 7168  }
   0xe   : > { %195 = sbr.rel (%p192_p9) target bundleno = 634 (0x27a), region = 36  ;;  %460 = vset.pattern.permute.xlu0 (!%p192_p9), %v529_v0  ;;  %v279_v20 = vstv (!%p192_p9), %s415_s20  ;;  %s225_s22 = sand.u32 (!%p192_p9), 1, %s519_s16  }
   0xf   : > { %v249_v8 = vand.u32 (!%p192_p9), 127, %v248_v5  ;;  %v278_v19 = vshrl.u32 (!%p192_p9), %v248_v5, 7  ;;  %s410_s23 = sshll.u32 (!%p192_p9), %s225_s22, 3  ;;  %s417_s29 = sshll.u32 (!%p192_p9), %s577_s19, 7 }
  0x10   : > { %s626_s6 = scalar_lea.hbm (!%p192_p9), %s670_s4, %s417_s29  ;;  %s298_s7 = scalar_lea.sflag (!%p192_p9), [#allocation3], %s225_s22 }
  0x11   : > { %v280_v22 = vadd.s32 (!%p192_p9), %v279_v20, %v278_v19  ;;  %s530_s9 = smov (!%p192_p9), [#allocation2]  }
  0x13   : > { %vm281_vm2 = vcmp.lt.s32.totalorder (!%p192_p9), %v280_v22, 10 }
  0x15   : > { %s229_s27 = scalar_select %p228_p10, %s577_s19, 1 }
  0x16   : > { %s469_s19 = sshll.u32 %s530_s9, 4  ;;  %s470_s19 = int_to_ptr.vmem [resolvable:$false] %s469_s19 }
  0x17   : > { %s411_s28 = sshll.u32 %s229_s27, 3  ;;  %s227_s27 = scalar_lea.vmem [#allocation2], %s410_s23 }
  0x18   : > { %s239_s5 = scalar_lea.vmem %s668_s2, %s411_s28  ;;  %s243_s8 = scalar_lea.vmem %s669_s3, %s411_s28 }
  0x19   : > { %v246_v1 = vld [vmem:[%s239_s5] sm:$0xff]  ;;  %s235_s11 = scalar_lea.vmem %s667_s1, %s411_s28  ;;  %s231_s14 = scalar_lea.vmem %s666_s0, %s411_s28 }
  0x1a   : > { %v247_v2 = vld [vmem:[%s243_s8] sm:$0xff]  ;;  %256 = vperm.xlu0 %460, %v246_v1   ;;  %s311_s28 = sshll.u32 %s227_s27, 4  ;;  %s471_s10 = scalar_lea.vmem %s470_s19, 256  ;;  %s621_s28 = int_to_ptr.vmem [resolvable:$true] %s311_s28 }
  0x1b   : > { %v274_v3 = vsub.f32 %v247_v2, %v246_v1  ;;  %v245_v4 = vld [vmem:[%s235_s11] sm:$0xff]  ;;  %s465_s8 = scalar_lea.vmem %s621_s28, 128  ;;  %p472_p0 = scmp.lt.s32.totalorder %s621_s28, %s470_s19 }
  0x1c   : > { %v244_v7 = vld [vmem:[%s231_s14] sm:$0xff]  ;;  %p466_p11 = scmp.ne.s32.totalorder %s621_s28, %s465_s8  ;;  %p473_p1 = scmp.lt.s32.totalorder %s471_s10, %s465_s8 }
  0x1e   : > { %251 = vperm.xlu0 %460, %v245_v4   ;;  %p467_p12 = pnand %p466_p11, %p594_p5  ;;  %p474_p2 = por %p473_p1, %p472_p0 }
  0x20   : > { %p468_p13 = pneg %p467_p12 }
  0x22   : > { %p475_p3 = pnand %p474_p2, %p468_p13 }
  0x99   : > { %v257_v6 = vpop.permute.xlu0 %256 }
  0x9a   : > { %v259_v9 = vsub.f32 %v244_v7, %v257_v6 }
  0x9d   : > { %v252_v10 = vpop.permute.xlu0 %251 }
  0x9e   : > { %vm253_vm1 = vcmp.eq.s32.totalorder %v249_v8, %v252_v10 }
  0x9f   : > { %v260_v11 = vsel %vm253_vm1, %v259_v9, %v244_v7 }
  0xa0   : > { %v262_v12 = vsel %vm261_vm0, %v260_v11, -inf }
  0xa1   : > { %263 = vmax.xlane.f32.xlu1 %v262_v12 }
 0x12e   : > { %v264_v13 = vpop.xlane.xlu1 %263 }
 0x12f   : > { %v265_v14 = vsub.f32 %v260_v11, %v264_v13 }
 0x131   : > { %v266_v15 = vmul.f32 1.442695, %v265_v14 }
 0x133   : > { %461 = vpow2.f32 %v266_v15 }
 0x13d   : > { %v462_v16 = vpop.eup %461 }
 0x13e   : > { %v268_v17 = vsel %vm261_vm0, %v462_v16, 0.0 }
 0x13f   : > { %269 = vadd.xlane.f32.xlu1 %v268_v17 }
 0x1cc   : > { %v270_v18 = vpop.xlane.xlu1 %269 }
 0x1cd   : > { %463 = vlog2.f32 %v270_v18 }
 0x1d7   : > { %v464_v21 = vpop.eup %463 }
 0x1d8   : > { %v272_v23 = vmul.f32 0.6931472, %v464_v21 }
 0x1da   : > { %v273_v24 = vadd.f32 %v272_v23, %v264_v13 }
 0x1dc   : > { %v275_v25 = vsub.f32 %v273_v24, %v274_v3 }
 0x1de   : > { %v282_v26 = vsel %vm281_vm2, %v275_v25, 0.0 }
 0x1df   : > { %v284_v27 = vsel %vm283_vm3, %v282_v26, 0.0 }
 0x1e0   : > { %v285_v28 = vrot.slane %v284_v27, 4 }
 0x1e2   : > { %v286_v29 = vadd.f32 %v285_v28, %v284_v27 }
 0x1e4   : > { %v287_v30 = vrot.slane %v286_v29, 2 }
 0x1e6   : > { %v288_v31 = vadd.f32 %v287_v30, %v286_v29 }
 0x1e8   : > { %v289_v32 = vrot.slane %v288_v31, 1 }
 0x1ea   : > { %v290_v33 = vadd.f32 %v289_v32, %v288_v31 }
 0x1ec   : > { %293 = vperm.xlu0 %460, %v290_v33  }
 0x26b   : > { %v294_v34 = vpop.permute.xlu0 %293 }
 0x26c   : > { %296 = vst [vmem:[%s227_s27] sm:$0xff] %v294_v34 }
 0x26d   : > { %478 = shalt.err (!%p475_p3)
}
 0x26e   : > { %s479_s11 = scalar_lea.hbm %s626_s6, 128  ;;  %s483_s14 = scalar_lea.hbm %s670_s4, 256 }
 0x26f   : > { %p480_p4 = scmp.ne.s32.totalorder %s626_s6, %s479_s11  ;;  %p484_p9 = scmp.lt.u32.totalorder %s626_s6, %s670_s4 }
 0x270   : > { %p485_p10 = scmp.lt.u32.totalorder %s483_s14, %s479_s11  ;;  %p487_p12 = scmp.lt.u32.totalorder %s479_s11, %s626_s6 }
 0x271   : > { %p481_p7 = pnand %p480_p4, %p594_p5 }
 0x272   : > { %p486_p11 = por %p485_p10, %p484_p9 }
 0x273   : > { %p482_p8 = pneg %p481_p7 }
 0x274   : > { %p488_p13 = por %p487_p12, %p486_p11 }
 0x276   : > { %p489_p0 = pnand %p488_p13, %p482_p8 }
 0x278   : > { %492 = shalt.err (!%p489_p0)
}
 0x279   : > { %420 = dma.vmem_to_hbm [thread:$0]  (%p594_p5), %s621_s28, 128, %s626_s6, %s298_s7  }
 0x27a PF: > { %p426_p1 = scmp.ge.s32.totalorder %s527_s18, 2  ;;  %s323_s23 = sand.u32 1, %s515_s15  }
 0x27b   : > { %s324_s27 = scalar_lea.sflag [#allocation3], %s323_s23 }
 0x27c   : > { %p423_p2 = pnand %p426_p1, %p598_p6 }
 0x27e   : > { %510 = dma.done.wait (!%p423_p2), %s324_s27, 128  }
 0x27f   : > { %512 = vsyncadd (!%p423_p2), %s324_s27, 4294967168  ;;  %p14_p3 = scmp.ge.s32.totalorder %s581_s21, 4   ;;  %s673_s15 = smov %s519_s16 }
 0x280   : > { %s674_s16 = smov %s523_s17  ;;  %s675_s17 = smov %s592_s24 }
 0x281   : > { %s676_s18 = smov %s581_s21  ;;  %16 = sbr.rel (!%p14_p3) target bundleno = 3 (0x3), region = 80 }
 0x288   :  { %329 = vsyncpa [#allocation3], 1 }
 0x289   :  { %331 = vsyncpa [#allocation3 + $0x1], 1 }

</bundles_post_ra>
